<compile_context>
chip_gen: v7x
topology: tpu7x:2x2x1
jax: 0.10.0
libtpu: 0.0.40
codegen_flags: <defaults>
</compile_context>

<pallas_src>
import math

import jax
import jax.numpy as jnp
from jax.experimental import pallas as pl
from jax.experimental.pallas import tpu as pltpu

# ----------------------------- configuration --------------------------------
BATCH = 8
INPUT_DIM = 128          # logits dim (2 * embed_dim in the celltrip policy)
HIDDEN_DIM = INPUT_DIM   # module default: hidden_dim = input_dim
OUTPUT_DIM = 3           # continuous action dim
LOG_STD_INIT = -0.5      # nn.Parameter(log_std); nonzero so the test is meaningful
LOG_2PI = math.log(2.0 * math.pi)


# ------------------------------- kernel --------------------------------------
def continuous_actions_kernel(x_ref, w1_ref, b1_ref, w2_ref, b2_ref,
                              log_std_ref, eps_ref,
                              action_ref, logp_ref, ent_ref):
    """Fused decider MLP + Normal sample / log_prob / entropy.

    x_ref            : (B, INPUT_DIM)  bf16   (logits, pre-cast in the wrapper)
    w1_ref, w2_ref   : bf16 weights (MXU operands)
    b1_ref, b2_ref   : (1, H) / (1, OUT) f32 biases
    log_std_ref      : (1, 1) f32
    eps_ref          : (B, OUT) f32 standard-normal noise
    outputs          : action (B, OUT), logp (B, 1), entropy (B, 1), all f32
    """
    # decider: ReLU -> Linear -> ReLU -> Linear -> Tanh
    x = jnp.maximum(x_ref[...], 0.0)                                   # leading ReLU
    h = jnp.dot(x, w1_ref[...], preferred_element_type=jnp.float32) + b1_ref[...]
    h = jnp.maximum(h, 0.0)
    pre = jnp.dot(h.astype(jnp.bfloat16), w2_ref[...],
                  preferred_element_type=jnp.float32) + b2_ref[...]
    loc = jnp.tanh(pre)                                                # EUP

    log_std = log_std_ref[...]                                         # (1, 1)
    std = jnp.exp(log_std)                                             # EUP
    inv_std = jnp.exp(-log_std)                                        # avoids VALU divide

    eps = eps_ref[...]
    action = loc + std * eps                                           # dist.sample()

    # Normal log_prob, summed over the action dim.
    z = (action - loc) * inv_std
    logp = -0.5 * (z * z) - (log_std + 0.5 * LOG_2PI)                  # (B, OUT)

    action_ref[...] = action
    logp_ref[...] = jnp.sum(logp, axis=-1, keepdims=True)

    # Normal entropy per element = 0.5 + 0.5*log(2*pi) + log_std, summed over dim.
    ent_row = (0.5 + 0.5 * LOG_2PI + log_std) * float(OUTPUT_DIM)      # (1, 1)
    ent_ref[...] = jnp.zeros_like(ent_ref) + ent_row


# ------------------------------- wrapper --------------------------------------
def continuous_actions_forward(w1, b1, w2, b2, log_std, logits, eps):
    """Single fused pallas_call (no grid): everything resident in VMEM."""
    b = logits.shape[0]
    vmem = pl.BlockSpec(memory_space=pltpu.MemorySpace.VMEM)
    out_shapes = (
        jax.ShapeDtypeStruct((b, OUTPUT_DIM), jnp.float32),   # action
        jax.ShapeDtypeStruct((b, 1), jnp.float32),            # log_prob (summed)
        jax.ShapeDtypeStruct((b, 1), jnp.float32),            # entropy  (summed)
    )
    action, logp, ent = pl.pallas_call(
        continuous_actions_kernel,
        out_shape=out_shapes,
        in_specs=[vmem] * 7,
        out_specs=(vmem, vmem, vmem),
    )(
        logits.astype(jnp.bfloat16),      # cast at the MXU boundary (also halves DMA)
        w1.astype(jnp.bfloat16), b1,
        w2.astype(jnp.bfloat16), b2,
        log_std, eps,
    )
    return action, logp[:, 0], ent[:, 0]


# --------------------------- pure-JAX reference --------------------------------
def ref_forward(w1, b1, w2, b2, log_std, logits, eps):
    x = jnp.maximum(logits.astype(jnp.bfloat16), 0.0)
    h = jnp.dot(x, w1.astype(jnp.bfloat16),
                preferred_element_type=jnp.float32) + b1
    h = jnp.maximum(h, 0.0)
    pre = jnp.dot(h.astype(jnp.bfloat16), w2.astype(jnp.bfloat16),
                  preferred_element_type=jnp.float32) + b2
    loc = jnp.tanh(pre)
    std = jnp.exp(log_std)                                   # (1, 1)
    action = loc + std * eps
    z = (action - loc) / std
    logp = jnp.sum(-0.5 * z * z - (log_std + 0.5 * LOG_2PI), axis=-1)
    ent = jnp.sum(jnp.broadcast_to(0.5 + 0.5 * LOG_2PI + log_std, action.shape),
                  axis=-1)
    return action, logp, ent


# ---------------------------------- main ---------------------------------------
if __name__ == "__main__":
    key = jax.random.PRNGKey(0)
    k_w1, k_b1, k_w2, k_b2, k_x, k_eps = jax.random.split(key, 6)

    w1 = jax.random.normal(k_w1, (INPUT_DIM, HIDDEN_DIM), jnp.float32) / math.sqrt(INPUT_DIM)
    b1 = jax.random.normal(k_b1, (1, HIDDEN_DIM), jnp.float32) * 0.01
    w2 = jax.random.normal(k_w2, (HIDDEN_DIM, OUTPUT_DIM), jnp.float32) / math.sqrt(HIDDEN_DIM)
    b2 = jax.random.normal(k_b2, (1, OUTPUT_DIM), jnp.float32) * 0.01
    log_std = jnp.full((1, 1), LOG_STD_INIT, jnp.float32)

    logits = jax.random.normal(k_x, (BATCH, INPUT_DIM), jnp.float32)
    eps = jax.random.normal(k_eps, (BATCH, OUTPUT_DIM), jnp.float32)  # dist.sample noise

    action, logp, ent = continuous_actions_forward(w1, b1, w2, b2, log_std, logits, eps)
    jax.block_until_ready((action, logp, ent))

    ref_action, ref_logp, ref_ent = ref_forward(w1, b1, w2, b2, log_std, logits, eps)

    assert action.shape == (BATCH, OUTPUT_DIM)
    assert logp.shape == (BATCH,)
    assert ent.shape == (BATCH,)
    assert jnp.allclose(action, ref_action, rtol=1e-4, atol=1e-4)
    assert jnp.allclose(logp, ref_logp, rtol=1e-4, atol=1e-4)
    assert jnp.allclose(ent, ref_ent, rtol=1e-4, atol=1e-4)

    print("KERNEL_OK")
</pallas_src>

<mosaic_0001>
module attributes {stable_mosaic.version = 11 : i64} {
  func.func @continuous_actions_kernel(%arg0: memref<8x128xbf16, #tpu.memory_space<vmem>>, %arg1: memref<128x128xbf16, #tpu.memory_space<vmem>>, %arg2: memref<1x128xf32, #tpu.memory_space<vmem>>, %arg3: memref<128x3xbf16, #tpu.memory_space<vmem>>, %arg4: memref<1x3xf32, #tpu.memory_space<vmem>>, %arg5: memref<1x1xf32, #tpu.memory_space<vmem>>, %arg6: memref<8x3xf32, #tpu.memory_space<vmem>>, %arg7: memref<8x3xf32, #tpu.memory_space<vmem>>, %arg8: memref<8x1xf32, #tpu.memory_space<vmem>>, %arg9: memref<8x1xf32, #tpu.memory_space<vmem>>) attributes {dimension_semantics = [], scalar_prefetch = 0 : i64, scratch_operands = 0 : i64, tpu.core_type = #tpu.core_type<tc>} {
    %c0 = arith.constant 0 : index
    %c0_0 = arith.constant 0 : index
    %0 = vector.load %arg0[%c0, %c0_0] : memref<8x128xbf16, #tpu.memory_space<vmem>>, vector<8x128xbf16>
    %cst = arith.constant 0.000000e+00 : bf16
    %1 = vector.broadcast %cst : bf16 to vector<8x128xbf16>
    %2 = arith.maximumf %0, %1 : vector<8x128xbf16>
    %c0_1 = arith.constant 0 : index
    %c0_2 = arith.constant 0 : index
    %3 = vector.load %arg1[%c0_1, %c0_2] : memref<128x128xbf16, #tpu.memory_space<vmem>>, vector<128x128xbf16>
    %cst_3 = arith.constant dense<0.000000e+00> : vector<8x128xf32>
    %4 = tpu.matmul %2, %3, %cst_3 {dimension_numbers = #tpu.dot_dimension_numbers<[1], [0], [0], [1], [0, 0, 1, 1], [], []>} : vector<8x128xbf16>, vector<128x128xbf16>, vector<8x128xf32> -> vector<8x128xf32>
    %c0_4 = arith.constant 0 : index
    %c0_5 = arith.constant 0 : index
    %5 = vector.load %arg2[%c0_4, %c0_5] : memref<1x128xf32, #tpu.memory_space<vmem>>, vector<1x128xf32>
    %6 = vector.broadcast %5 : vector<1x128xf32> to vector<8x128xf32>
    %7 = arith.addf %4, %6 : vector<8x128xf32>
    %cst_6 = arith.constant 0.000000e+00 : f32
    %8 = vector.broadcast %cst_6 : f32 to vector<8x128xf32>
    %9 = arith.maximumf %7, %8 : vector<8x128xf32>
    %10 = arith.truncf %9 : vector<8x128xf32> to vector<8x128xbf16>
    %c0_7 = arith.constant 0 : index
    %c0_8 = arith.constant 0 : index
    %11 = vector.load %arg3[%c0_7, %c0_8] : memref<128x3xbf16, #tpu.memory_space<vmem>>, vector<128x3xbf16>
    %cst_9 = arith.constant dense<0.000000e+00> : vector<8x3xf32>
    %12 = tpu.matmul %10, %11, %cst_9 {dimension_numbers = #tpu.dot_dimension_numbers<[1], [0], [0], [1], [0, 0, 1, 1], [], []>} : vector<8x128xbf16>, vector<128x3xbf16>, vector<8x3xf32> -> vector<8x3xf32>
    %c0_10 = arith.constant 0 : index
    %c0_11 = arith.constant 0 : index
    %13 = vector.load %arg4[%c0_10, %c0_11] : memref<1x3xf32, #tpu.memory_space<vmem>>, vector<1x3xf32>
    %14 = vector.broadcast %13 : vector<1x3xf32> to vector<8x3xf32>
    %15 = arith.addf %12, %14 : vector<8x3xf32>
    %16 = math.tanh %15 : vector<8x3xf32>
    %c0_12 = arith.constant 0 : index
    %c0_13 = arith.constant 0 : index
    %17 = vector.load %arg5[%c0_12, %c0_13] : memref<1x1xf32, #tpu.memory_space<vmem>>, vector<1x1xf32>
    %18 = math.exp %17 : vector<1x1xf32>
    %cst_14 = arith.constant 0.000000e+00 : f32
    %19 = vector.broadcast %cst_14 : f32 to vector<1x1xf32>
    %20 = arith.subf %19, %17 : vector<1x1xf32>
    %21 = math.exp %20 : vector<1x1xf32>
    %c0_15 = arith.constant 0 : index
    %c0_16 = arith.constant 0 : index
    %22 = vector.load %arg6[%c0_15, %c0_16] : memref<8x3xf32, #tpu.memory_space<vmem>>, vector<8x3xf32>
    %23 = vector.broadcast %18 : vector<1x1xf32> to vector<8x3xf32>
    %24 = arith.mulf %23, %22 : vector<8x3xf32>
    %25 = arith.addf %16, %24 : vector<8x3xf32>
    %26 = arith.subf %25, %16 : vector<8x3xf32>
    %27 = vector.broadcast %21 : vector<1x1xf32> to vector<8x3xf32>
    %28 = arith.mulf %26, %27 : vector<8x3xf32>
    %29 = arith.mulf %28, %28 : vector<8x3xf32>
    %cst_17 = arith.constant -5.000000e-01 : f32
    %30 = vector.broadcast %cst_17 : f32 to vector<8x3xf32>
    %31 = arith.mulf %30, %29 : vector<8x3xf32>
    %cst_18 = arith.constant 0.918938517 : f32
    %32 = vector.broadcast %cst_18 : f32 to vector<1x1xf32>
    %33 = arith.addf %17, %32 : vector<1x1xf32>
    %34 = vector.broadcast %33 : vector<1x1xf32> to vector<8x3xf32>
    %35 = arith.subf %31, %34 : vector<8x3xf32>
    %c0_19 = arith.constant 0 : index
    %c0_20 = arith.constant 0 : index
    %36 = vector.load %arg7[%c0_19, %c0_20] : memref<8x3xf32, #tpu.memory_space<vmem>>, vector<8x3xf32>
    tpu.vector_store %arg7[%c0_19, %c0_20], %25 {strides = array<i32>} : memref<8x3xf32, #tpu.memory_space<vmem>>, vector<8x3xf32>,
    %cst_21 = arith.constant dense<0.000000e+00> : vector<8xf32>
    %37 = vector.multi_reduction <add>, %35, %cst_21 [1] : vector<8x3xf32> to vector<8xf32>
    %38 = vector.shape_cast %37 : vector<8xf32> to vector<8x1xf32>
    %c0_22 = arith.constant 0 : index
    %c0_23 = arith.constant 0 : index
    %39 = vector.load %arg8[%c0_22, %c0_23] : memref<8x1xf32, #tpu.memory_space<vmem>>, vector<8x1xf32>
    tpu.vector_store %arg8[%c0_22, %c0_23], %38 {strides = array<i32>} : memref<8x1xf32, #tpu.memory_space<vmem>>, vector<8x1xf32>,
    %cst_24 = arith.constant 1.41893852 : f32
    %40 = vector.broadcast %cst_24 : f32 to vector<1x1xf32>
    %41 = arith.addf %40, %17 : vector<1x1xf32>
    %cst_25 = arith.constant 3.000000e+00 : f32
    %42 = vector.broadcast %cst_25 : f32 to vector<1x1xf32>
    %43 = arith.mulf %41, %42 : vector<1x1xf32>
    %cst_26 = arith.constant 0.000000e+00 : f32
    %44 = vector.broadcast %cst_26 : f32 to vector<8x1xf32>
    %45 = vector.broadcast %43 : vector<1x1xf32> to vector<8x1xf32>
    %46 = arith.addf %44, %45 : vector<8x1xf32>
    %c0_27 = arith.constant 0 : index
    %c0_28 = arith.constant 0 : index
    %47 = vector.load %arg9[%c0_27, %c0_28] : memref<8x1xf32, #tpu.memory_space<vmem>>, vector<8x1xf32>
    tpu.vector_store %arg9[%c0_27, %c0_28], %46 {strides = array<i32>} : memref<8x1xf32, #tpu.memory_space<vmem>>, vector<8x1xf32>,
    return
  }
}

</mosaic_0001>

<bundles_post_ra>
// kernel: tpu_custom_call.1
= control target key start
LH: loop header
LB: loop body
LE: loop exit
PB: predicated region body
PF: predicated region fallthrough
CT: control target
= control target key end

     0   :  { %v433_v0 = vmov 0.0   ;;  %vm434_vm0 = vmmov 0   ;;  %v435_v3 = vmov 0   ;;  %v267_v21 = vlaneseq  ;;  %s560_s1 = inlined_call_operand.vmem [shape: bf16[128,128], index: 1, kind: input, shape index: {}]   ;;  %s561_s3 = inlined_call_operand.vmem [shape: bf16[128,3], index: 3, kind: input, shape index: {}]   ;;  %s562_s0 = inlined_call_operand.vmem [shape: bf16[8,128], index: 0, kind: input, shape index: {}]   ;;  %s563_s5 = inlined_call_operand.<no memory space> [shape: f32[1,1], index: 5, kind: input, shape index: {}]   ;;  %s564_s2 = inlined_call_operand.vmem [shape: f32[1,128], index: 2, kind: input, shape index: {}]   ;;  %s565_s9 = inlined_call_operand.vmem [shape: f32[8,1], index: 9, kind: output, shape index: {2}]   ;;  %s566_s4 = inlined_call_operand.vmem [shape: f32[1,3], index: 4, kind: input, shape index: {}]   ;;  %s567_s6 = inlined_call_operand.vmem [shape: f32[8,3], index: 6, kind: input, shape index: {}]   ;;  %s568_s7 = inlined_call_operand.vmem [shape: f32[8,3], index: 7, kind: output, shape index: {0}]   ;;  %s569_s8 = inlined_call_operand.vmem [shape: f32[8,1], index: 8, kind: output, shape index: {1}]  }
   0x1   :  { %366 = vmatprep.subr.bf16.mxu0 %v433_v0  ;;  %v411_v1 = vld [vmem:[%s560_s1] sm:$0xff]   ;;  %382 = vmatprep.mubr.msk.bf16.mxu0 %vm434_vm0, %v433_v0  ;;  %v412_v2 = vld [vmem:[%s560_s1 + $0x8] sm:$0xff]   ;;  %v413_v4 = vld [vmem:[%s560_s1 + $0x10] sm:$0xff]   ;;  %v15_v20 = vstv %s563_s5  ;;  %vm306_vm1 = vcmask 7168   ;;  %vm301_vm2 = vcmask 23552  }
   0x2   :  { %386 = vmatprep.subr.bf16.mxu1 %v433_v0  ;;  %402 = vmatprep.mubr.msk.bf16.mxu1 %vm434_vm0, %v433_v0  ;;  %v419_v5 = vld [vmem:[%s561_s3] sm:$0xff]   ;;  %v414_v6 = vld [vmem:[%s560_s1 + $0x18] sm:$0xff]   ;;  %v420_v7 = vld [vmem:[%s561_s3 + $0x8] sm:$0xff]   ;;  %16 = vst [vmem:[#allocation2] sm:$0x1] %v15_v20  ;;  %v268_v22 = vshrl.u32 %v267_v21, 7 }
   0x3   :  { %367 = vmatpush3.bf16.msra.mxu0 %v411_v1  ;;  %409 = vset.pattern.permute.xlu0 %v435_v3  ;;  %v415_v8 = vld [vmem:[%s560_s1 + $0x20] sm:$0xff]   ;;  %v421_v9 = vld [vmem:[%s561_s3 + $0x10] sm:$0xff]   ;;  %v416_v10 = vld [vmem:[%s560_s1 + $0x28] sm:$0xff]  }
   0x4   :  { %368 = vmatprep.subr.bf16.mxu0 %v433_v0  ;;  %410 = vset.pattern.permute.xlu1 %v435_v3  ;;  %v422_v11 = vld [vmem:[%s561_s3 + $0x18] sm:$0xff]   ;;  %v417_v12 = vld [vmem:[%s560_s1 + $0x30] sm:$0xff]   ;;  %v423_v13 = vld [vmem:[%s561_s3 + $0x20] sm:$0xff]   ;;  %v269_v25 = vsub.s32 0, %v268_v22 }
   0x5   :  { %387 = vmatpush3.bf16.msra.mxu1 %v419_v5  ;;  %v418_v14 = vld [vmem:[%s560_s1 + $0x38] sm:$0xff]   ;;  %v32_v15 = vld [vmem:[%s562_s0] sm:$0xf]  ;;  %v424_v16 = vld [vmem:[%s561_s3 + $0x28] sm:$0xff]  }
   0x6   :  { %388 = vmatprep.subr.bf16.mxu1 %v433_v0  ;;  %v33_v17 = vmax.bf16 %v435_v3, %v32_v15  ;;  %v425_v18 = vld [vmem:[%s561_s3 + $0x30] sm:$0xff]   ;;  %v426_v19 = vld [vmem:[%s561_s3 + $0x38] sm:$0xff]   ;;  %v330_v34 = vld [vmem:[%s564_s2] ss:$0 sm:$0xff] }
   0x7   :  { %369 = vmatpush3.bf16.msra.mxu0 %v412_v2  ;;  %v339_v45 = vld [vmem:[%s566_s4] ss:$0 sm:$0xff] }
   0x8   :  { %370 = vmatprep.subr.bf16.mxu0 %v433_v0  ;;  %v265_v51 = vld [vmem:[%s567_s6] sm:$0xff] }
   0x9   :  { %389 = vmatpush3.bf16.msra.mxu1 %v420_v7  ;;  %v259_v23 = vld [vmem:[#allocation2] sm:$0x1] }
   0xa   :  { %390 = vmatprep.subr.bf16.mxu1 %v433_v0  ;;  %v260_v24 = vmul.f32 1.442695, %v259_v23  ;;  %v262_v26 = vsub.f32 0.0, %v259_v23  ;;  %v290_v27 = vadd.f32 0.9189385, %v259_v23 }
   0xb   :  { %371 = vmatpush3.bf16.msra.mxu0 %v413_v4  ;;  %v308_v42 = vadd.f32 1.4189385, %v259_v23 }
   0xc   :  { %372 = vmatprep.subr.bf16.mxu0 %v433_v0  ;;  %427 = vpow2.f32 %v260_v24  ;;  %v263_v28 = vmul.f32 1.442695, %v262_v26  ;;  %v295_v29 = vrot.slane %v290_v27, %v269_v25 }
   0xd   :  { %391 = vmatpush3.bf16.msra.mxu1 %v421_v9  ;;  %v309_v43 = vmul.f32 3.0, %v308_v42 }
   0xe   :  { %392 = vmatprep.subr.bf16.mxu1 %v433_v0  ;;  %429 = vpow2.f32 %v263_v28  ;;  %297 = vperm.xlu1 %410, %v295_v29  }
   0xf   :  { %373 = vmatpush3.bf16.msra.mxu0 %v414_v6  ;;  %v314_v44 = vrot.slane %v309_v43, %v269_v25 }
  0x10   :  { %374 = vmatprep.subr.bf16.mxu0 %v433_v0 }
  0x11   :  { %393 = vmatpush3.bf16.msra.mxu1 %v422_v11  ;;  %317 = vst.msk [vmem:[%s565_s9] sm:$0xff] %vm306_vm1, %v314_v44 }
  0x12   :  { %394 = vmatprep.subr.bf16.mxu1 %v433_v0 }
  0x13   :  { %375 = vmatpush3.bf16.msra.mxu0 %v415_v8 }
  0x14   :  { %376 = vmatprep.subr.bf16.mxu0 %v433_v0 }
  0x15   :  { %395 = vmatpush3.bf16.msra.mxu1 %v423_v13 }
  0x16   :  { %396 = vmatprep.subr.bf16.mxu1 %v433_v0  ;;  %v428_v30 = vpop.eup %427 }
  0x17   :  { %377 = vmatpush3.bf16.msra.mxu0 %v416_v10  ;;  %v270_v31 = vrot.slane %v428_v30, %v269_v25 }
  0x18   :  { %378 = vmatprep.subr.bf16.mxu0 %v433_v0  ;;  %v430_v32 = vpop.eup %429 }
  0x19   :  { %397 = vmatpush3.bf16.msra.mxu1 %v424_v16  ;;  %272 = vperm.xlu0 %409, %v270_v31   ;;  %v282_v33 = vrot.slane %v430_v32, %v269_v25 }
  0x1a   :  { %398 = vmatprep.subr.bf16.mxu1 %v433_v0 }
  0x1b   :  { %379 = vmatpush3.bf16.msra.mxu0 %v417_v12 }
  0x1c   :  { %380 = vmatprep.subr.bf16.mxu0 %v433_v0 }
  0x1d   :  { %399 = vmatpush3.bf16.msra.mxu1 %v425_v18  ;;  %284 = vperm.xlu0 %409, %v282_v33  }
  0x1e   :  { %400 = vmatprep.subr.bf16.mxu1 %v433_v0 }
  0x1f   :  { %381 = vmatpush3.bf16.msra.mxu0 %v418_v14 }
  0x21   :  { %401 = vmatpush3.bf16.msra.mxu1 %v426_v19 }
  0x22   :  { %383 = vmatmul.mubr.bf16.vlgmr.msra.gmra.mrb[0].mxu0 %v33_v17 }
  0x8d   :  { %v298_v60 = vpop.permute.xlu1 %297 }
  0x98   :  { %v273_v52 = vpop.permute.xlu0 %272 }
  0x99   :  { %v275_v53 = vmul.f32 %v273_v52, %v265_v51 }
  0x9c   :  { %v285_v57 = vpop.permute.xlu0 %284 }
  0xf5   :  { %v139_v35 = vpop.f32.mrb[0].mxu0 }
  0xf6   :  { %v140_v36 = vadd.f32 %v330_v34, %v139_v35  ;;  %v384_v37 = vpop.f32.mrb[1].mxu0 }
  0xf7   :  { %v142_v38 = vpop.f32.mrb[2].mxu0 }
  0xf8   :  { %v145_v39 = vmax.f32 %v140_v36, 0.0  ;;  %v385_v40 = vpop.f32.mrb[3].mxu0 }
  0xfa   :  { %v146_v41 = vpack.c.bf16 %v145_v39, %v145_v39 }
  0xfc   :  { %403 = vmatmul.mubr.bf16.vlgmr.msra.gmra.mrb[0].mxu1 %v146_v41 }
 0x1cf   :  { %v252_v46 = vpop.f32.mrb[0].mxu1 }
 0x1d0   :  { %v253_v47 = vadd.f32 %v339_v45, %v252_v46  ;;  %v404_v48 = vpop.f32.mrb[1].mxu1 }
 0x1d1   :  { %v255_v49 = vpop.f32.mrb[2].mxu1 }
 0x1d2   :  { %431 = vtanh.f32 %v253_v47  ;;  %v405_v50 = vpop.f32.mrb[3].mxu1 }
 0x1dc   :  { %v432_v54 = vpop.eup %431 }
 0x1dd   :  { %v276_v55 = vadd.f32 %v432_v54, %v275_v53 }
 0x1df   :  { %v277_v56 = vsub.f32 %v276_v55, %v432_v54  ;;  %302 = vst.msk [vmem:[%s568_s7] sm:$0xff] %vm301_vm2, %v276_v55 }
 0x1e1   :  { %v287_v58 = vmul.f32 %v285_v57, %v277_v56 }
 0x1e3   :  { %v288_v59 = vmul.f32 %v287_v58, %v287_v58 }
 0x1e5   :  { %v289_v61 = vmul.f32 -0.5, %v288_v59 }
 0x1e7   :  { %v300_v62 = vsub.f32 %v289_v61, %v298_v60 }
 0x1e9   :  { %v303_v63 = vsel %vm301_vm2, %v300_v62, 0.0 }
 0x1ea   :  { %304 = vadd.xlane.f32.xlu1 %v303_v63 }
 0x277   :  { %v305_v0 = vpop.xlane.xlu1 %304 }
 0x278   :  { %307 = vst.msk [vmem:[%s569_s8] sm:$0xff] %vm306_vm1, %v305_v0 }

</bundles_post_ra>
